<compile_context>
chip_gen: v7x
topology: tpu7x:2x2x1
jax: 0.10.0
libtpu: 0.0.40
codegen_flags: <defaults>
</compile_context>

<pallas_src>
import functools

import jax
import jax.numpy as jnp
from jax.experimental import pallas as pl
from jax.experimental.pallas import tpu as pltpu

EPS = 1e-8
_LANE = 128
_MAX_TILE = 512   # TODO(synk): cap lower on v7x (64 MiB VMEM) for very large C


def _round_up(x, m):
    return ((x + m - 1) // m) * m


def _pick_tile(t_pad):
    for cand in (_MAX_TILE, 384, 256, 128):
        if cand <= t_pad and t_pad % cand == 0:
            return cand
    return t_pad


def _vmem_limit_bytes(needed):
    try:
        phys = int(pltpu.get_tpu_info().vmem_capacity_bytes)
    except Exception:
        phys = 128 << 20          # v5e/v6e physical; real v7x (64 MiB) comes from get_tpu_info
    return min(max(int(1.25 * needed) + (4 << 20), 32 << 20), int(0.85 * phys))


# --------------------------------------------------------------------------- kernels
def _stage(xs_ref, x_ref, halo_ref, pad, n, cdt):
    """Halo-only staging into a (C, n + 2*pad) VMEM scratch (no full zero fill)."""
    xs_ref[:, 0:pad] = halo_ref[:, 0:pad].astype(cdt)
    xs_ref[:, pad + n:] = halo_ref[:, pad:2 * pad].astype(cdt)
    xs_ref[:, pad:pad + n] = x_ref[...].astype(cdt)


def _dwconv(src_ref, w, n_out, K):
    # depthwise 'same' conv as K lane-offset multiply-adds.
    # TODO(synk): pltpu.roll-based taps (XLU slot) to avoid the unaligned reloads.
    acc = w[:, 0:1] * src_ref[:, 0:n_out]
    for j in range(1, K):
        acc = acc + w[:, j:j + 1] * src_ref[:, j:j + n_out]
    return acc


def _stats_kernel(xl_ref, hl_ref, xg_ref, hg_ref, w_ref, stats_ref,
                  xls_ref, xgs_ref, *, K, C, TILE, T_true, cdt):
    """Pass 1 of the tiled gather-mode path: per-tile conv + gLN sum/sum-sq."""
    t = pl.program_id(1)
    pad = K // 2
    if pad > 0:
        _stage(xls_ref, xl_ref, hl_ref, pad, TILE, cdt)
        _stage(xgs_ref, xg_ref, hg_ref, pad, TILE, cdt)
        src_l, src_g = xls_ref, xgs_ref
    else:
        src_l, src_g = xl_ref, xg_ref

    w = w_ref[...].astype(cdt)
    y_l = _dwconv(src_l, w[:, 0:K], TILE, K)
    y_ge = _dwconv(src_g, w[:, K:2 * K], TILE, K)
    y_gg = _dwconv(src_g, w[:, 2 * K:3 * K], TILE, K)

    masked = (T_true % TILE) != 0
    if masked:
        col = t * TILE + jax.lax.broadcasted_iota(jnp.int32, (1, TILE), 1)
        valid = (col < T_true).astype(jnp.float32)

    def _sums(y):
        yf = y.astype(jnp.float32)
        if masked:
            yf = yf * valid
        return jnp.sum(yf), jnp.sum(yf * yf)

    s_l, ss_l = _sums(y_l)
    s_ge, ss_ge = _sums(y_ge)
    s_gg, ss_gg = _sums(y_gg)

    ones = jnp.ones((1, 128), jnp.float32)
    blk = jnp.concatenate(
        [s_l * ones, ss_l * ones, s_ge * ones, ss_ge * ones,
         s_gg * ones, ss_gg * ones, jnp.zeros((2, 128), jnp.float32)], axis=0)

    @pl.when(t == 0)
    def _():
        stats_ref[...] = blk

    @pl.when(t > 0)
    def _():
        stats_ref[...] += blk


def _fuse_kernel(xl_ref, hl_ref, xg_ref, hg_ref, w_ref, aff_ref, out_ref,
                 xls_ref, xgs_ref, *, K, C, TILE, cdt):
    """Pass 2 of the tiled gather-mode path: conv + folded-affine gLN + gate + fuse."""
    pad = K // 2
    if pad > 0:
        _stage(xls_ref, xl_ref, hl_ref, pad, TILE, cdt)
        _stage(xgs_ref, xg_ref, hg_ref, pad, TILE, cdt)
        src_l, src_g = xls_ref, xgs_ref
    else:
        src_l, src_g = xl_ref, xg_ref

    w = w_ref[...].astype(cdt)
    y_l = _dwconv(src_l, w[:, 0:K], TILE, K)
    y_ge = _dwconv(src_g, w[:, K:2 * K], TILE, K)
    y_gg = _dwconv(src_g, w[:, 2 * K:3 * K], TILE, K)

    aff = aff_ref[...]                                        # (C, 6) f32 scale/shift
    local_emb = y_l * aff[:, 0:1] + aff[:, 1:2]
    global_emb = y_ge * aff[:, 2:3] + aff[:, 3:4]
    gate = jax.nn.sigmoid(y_gg * aff[:, 4:5] + aff[:, 5:6])
    out_ref[...] = (local_emb * gate + global_emb).astype(out_ref.dtype)


def _upsample_kernel(xl_ref, xg_ref, w_ref, gb_ref, interp_ref, out_ref,
                     xls_ref, xgs_ref, *, K, C, T_pad, T_true, T_g, cdt):
    """T_local > T_global: conv/gLN at T_g, bf16 one-hot nearest upsample, fuse."""
    pad = K // 2
    if pad > 0:
        z = jnp.zeros((C, pad), cdt)
        xls_ref[:, 0:pad] = z
        xls_ref[:, pad + T_pad:] = z
        xls_ref[:, pad:pad + T_pad] = xl_ref[...].astype(cdt)
        xgs_ref[:, 0:pad] = z
        xgs_ref[:, pad + T_g:] = z
        xgs_ref[:, pad:pad + T_g] = xg_ref[...].astype(cdt)
        src_l, src_g = xls_ref, xgs_ref
    else:
        src_l, src_g = xl_ref, xg_ref

    w = w_ref[...].astype(cdt)
    gb = gb_ref[...]                                          # (C, 6) f32 gamma/beta
    y_l = _dwconv(src_l, w[:, 0:K], T_pad, K)
    y_ge = _dwconv(src_g, w[:, K:2 * K], T_g, K)
    y_gg = _dwconv(src_g, w[:, 2 * K:3 * K], T_g, K)

    mask = None
    if T_true != T_pad:
        lane = jax.lax.broadcasted_iota(jnp.int32, (1, T_pad), 1)
        mask = (lane < T_true).astype(jnp.float32)

    def _norm(y, col, n, m=None):
        # one-pass sum/sum-sq, folded into a per-channel affine (2 VALU ops/elem).
        yf = y.astype(jnp.float32)
        ym = yf if m is None else yf * m
        inv_n = 1.0 / n
        mean = jnp.sum(ym) * inv_n
        var = jnp.maximum(jnp.sum(ym * ym) * inv_n - mean * mean, 0.0)
        scale = gb[:, col:col + 1] * jax.lax.rsqrt(var + EPS)
        shift = gb[:, col + 1:col + 2] - mean * scale
        return yf * scale + shift

    local_emb = _norm(y_l, 0, C * T_true, mask)
    g_emb = _norm(y_ge, 2, C * T_g)
    gate_pre = _norm(y_gg, 4, C * T_g)

    # one MXU pass upsamples embedding and gate together (sigmoid commutes with
    # nearest selection).  TODO(synk): tile the one-hot along T_pad for long sequences.
    both = jnp.concatenate([g_emb, gate_pre], axis=0)          # (2C, T_g) f32
    up = jnp.dot(both, interp_ref[...].astype(jnp.float32),
                 preferred_element_type=jnp.float32)           # (2C, T_pad)
    global_emb = up[:C]
    gate = jax.nn.sigmoid(up[C:])
    out_ref[...] = (local_emb * gate + global_emb).astype(out_ref.dtype)


# --------------------------------------------------------------------------- wrapper
def injection_multi_sum(local_features, global_features, params):
    B, C, T_local = local_features.shape
    Bg, Cg, T_global = global_features.shape
    assert (B, C) == (Bg, Cg)
    K = params["w_local"].shape[-1]
    assert K % 2 == 1, "TODO(synk): even kernel_size ('same' asymmetric pad) not handled"
    pad = K // 2
    dt = local_features.dtype
    cdt = jnp.bfloat16 if dt == jnp.bfloat16 else jnp.float32
    # TODO(synk): on v5e (no bf16 VPU/EUP) force cdt = float32 even for bf16 inputs.
    isz = jnp.dtype(dt).itemsize
    csz = jnp.dtype(cdt).itemsize

    # pack the tiny per-channel params: one weight DMA instead of three.
    w_all = jnp.concatenate([params["w_local"], params["w_ge"], params["w_gg"]],
                            axis=1).astype(jnp.float32)                     # (C, 3K)

    # lane-dense output length (multiple of 128), sliced back at the end.
    T_pad = _round_up(T_local, _LANE)
    TILE = _pick_tile(T_pad)
    nt = T_pad // TILE
    hw = 2 * max(pad, 1)
    sq = pl.Squeezed()

    def pad_t(x):
        t = x.shape[-1]
        return x if t == T_pad else jnp.pad(x, ((0, 0), (0, 0), (0, T_pad - t)))

    def halos(x_p):
        # per-tile conv halo columns (B, nt, C, 2*pad) -- tiny side input.
        if pad == 0:
            return jnp.zeros((B, nt, C, hw), dt)
        xp = jnp.pad(x_p, ((0, 0), (0, 0), (pad, pad)))
        lefts = xp[:, :, :nt * TILE].reshape(B, C, nt, TILE)[..., :pad]
        rights = xp[:, :, 2 * pad:2 * pad + nt * TILE].reshape(B, C, nt, TILE)[..., TILE - pad:]
        return jnp.concatenate([lefts, rights], axis=-1).transpose(0, 2, 1, 3).astype(dt)

    # ------------------------------------------------------------ upsample mode
    if T_local > T_global:
        T_g = T_global
        gb_all = jnp.concatenate(
            [params["g_local"], params["b_local"], params["g_ge"],
             params["b_ge"], params["g_gg"], params["b_gg"]], axis=1).astype(jnp.float32)
        xl = pad_t(local_features)
        cols = jnp.arange(T_pad)
        src = (cols * T_g) // T_local                      # PyTorch nearest: floor(n*T_in/T_out)
        interp = ((src[None, :] == jnp.arange(T_g)[:, None]) &
                  (cols[None, :] < T_local)).astype(jnp.bfloat16)   # 0/1 exact in bf16

        need = (2 * isz * C * (2 * T_pad + T_g)
                + csz * C * (T_pad + T_g + 4 * pad)
                + 2 * T_g * T_pad
                + 4 * C * (3 * K + 6)
                + 8 * 4 * C * max(T_pad, T_g))
        kernel = functools.partial(_upsample_kernel, K=K, C=C, T_pad=T_pad,
                                   T_true=T_local, T_g=T_g, cdt=cdt)
        out = pl.pallas_call(
            kernel,
            out_shape=jax.ShapeDtypeStruct((B, C, T_pad), dt),
            grid=(B,),
            in_specs=[
                pl.BlockSpec((sq, C, T_pad), lambda b: (b, 0, 0)),
                pl.BlockSpec((sq, C, T_g), lambda b: (b, 0, 0)),
                pl.BlockSpec((C, 3 * K), lambda b: (0, 0), pipeline_mode=pl.Buffered(1)),
                pl.BlockSpec((C, 6), lambda b: (0, 0), pipeline_mode=pl.Buffered(1)),
                pl.BlockSpec((T_g, T_pad), lambda b: (0, 0), pipeline_mode=pl.Buffered(1)),
            ],
            out_specs=pl.BlockSpec((sq, C, T_pad), lambda b: (b, 0, 0)),
            scratch_shapes=[pltpu.VMEM((C, T_pad + 2 * pad), cdt),
                            pltpu.VMEM((C, T_g + 2 * pad), cdt)],
            compiler_params=pltpu.CompilerParams(
                dimension_semantics=("parallel",),
                vmem_limit_bytes=_vmem_limit_bytes(need)),
        )(xl, global_features, w_all, gb_all, interp)
        return out[:, :, :T_local] if T_pad != T_local else out

    # ------------------------------------------------------------ gather mode (tiled)
    idx = (jnp.arange(T_local) * T_global) // T_local
    g_in = jnp.take(global_features, idx, axis=-1)            # nearest gather of the input
    xl = pad_t(local_features)
    xg = pad_t(g_in)
    hl = halos(xl)
    hg = halos(xg)

    x_spec = pl.BlockSpec((sq, C, TILE), lambda b, t: (b, 0, t))
    h_spec = pl.BlockSpec((sq, sq, C, hw), lambda b, t: (b, t, 0, 0))
    w_spec = pl.BlockSpec((C, 3 * K), lambda b, t: (0, 0), pipeline_mode=pl.Buffered(1))

    need = (2 * isz * C * 2 * TILE
            + 2 * csz * C * (TILE + 2 * pad)
            + 4 * C * (3 * K + 6)
            + 8 * 4 * C * TILE)

    # pass 1: per-tile sum / sum-of-squares of the three conv outputs.
    stats = pl.pallas_call(
        functools.partial(_stats_kernel, K=K, C=C, TILE=TILE, T_true=T_local, cdt=cdt),
        out_shape=jax.ShapeDtypeStruct((B, 8, 128), jnp.float32),
        grid=(B, nt),
        in_specs=[x_spec, h_spec, x_spec, h_spec, w_spec],
        out_specs=pl.BlockSpec((sq, 8, 128), lambda b, t: (b, 0, 0)),
        scratch_shapes=[pltpu.VMEM((C, TILE + 2 * pad), cdt),
                        pltpu.VMEM((C, TILE + 2 * pad), cdt)],
        compiler_params=pltpu.CompilerParams(
            dimension_semantics=("parallel", "arbitrary"),
            vmem_limit_bytes=_vmem_limit_bytes(need)),
    )(xl, hl, xg, hg, w_all)

    # fold gLN into per-sample per-channel affines (scale, shift).
    n_elems = float(C * T_local)

    def fold(row, gamma, beta):
        s = stats[:, row, 0]
        ss = stats[:, row + 1, 0]
        mean = s / n_elems
        var = jnp.maximum(ss / n_elems - mean * mean, 0.0)
        scale = gamma[None, :, 0] * jax.lax.rsqrt(var + EPS)[:, None]       # (B, C)
        shift = beta[None, :, 0] - mean[:, None] * scale
        return scale, shift

    sc_l, sh_l = fold(0, params["g_local"], params["b_local"])
    sc_ge, sh_ge = fold(2, params["g_ge"], params["b_ge"])
    sc_gg, sh_gg = fold(4, params["g_gg"], params["b_gg"])
    aff = jnp.stack([sc_l, sh_l, sc_ge, sh_ge, sc_gg, sh_gg],
                    axis=-1).astype(jnp.float32)                            # (B, C, 6)

    # pass 2: recompute convs per tile, normalize (affine), gate, fuse.
    out = pl.pallas_call(
        functools.partial(_fuse_kernel, K=K, C=C, TILE=TILE, cdt=cdt),
        out_shape=jax.ShapeDtypeStruct((B, C, T_pad), dt),
        grid=(B, nt),
        in_specs=[x_spec, h_spec, x_spec, h_spec, w_spec,
                  pl.BlockSpec((sq, C, 6), lambda b, t: (b, 0, 0))],
        out_specs=pl.BlockSpec((sq, C, TILE), lambda b, t: (b, 0, t)),
        scratch_shapes=[pltpu.VMEM((C, TILE + 2 * pad), cdt),
                        pltpu.VMEM((C, TILE + 2 * pad), cdt)],
        compiler_params=pltpu.CompilerParams(
            dimension_semantics=("parallel", "parallel"),
            vmem_limit_bytes=_vmem_limit_bytes(need + 2 * isz * C * TILE)),
    )(xl, hl, xg, hg, w_all, aff)
    return out[:, :, :T_local] if T_pad != T_local else out


# ---------------- pure-JAX reference (correctness check) ----------------
def _ref_forward(local_features, global_features, params):
    K = params["w_local"].shape[-1]
    pad = K // 2

    def dwconv(x, w):
        T = x.shape[-1]
        xp = jnp.pad(x, ((0, 0), (0, 0), (pad, pad)))
        return sum(w[None, :, j:j + 1] * xp[:, :, j:j + T] for j in range(K))

    def gln(y, g, b):
        mean = jnp.mean(y, axis=(1, 2), keepdims=True)
        var = jnp.mean((y - mean) ** 2, axis=(1, 2), keepdims=True)
        return (y - mean) * jax.lax.rsqrt(var + EPS) * g[None] + b[None]

    def interp_nearest(x, T_out):
        T_in = x.shape[-1]
        idx = (jnp.arange(T_out) * T_in) // T_out
        return jnp.take(x, idx, axis=-1)

    T_local = local_features.shape[-1]
    T_global = global_features.shape[-1]

    local_emb = gln(dwconv(local_features, params["w_local"]),
                    params["g_local"], params["b_local"])
    if T_local > T_global:
        global_emb = interp_nearest(
            gln(dwconv(global_features, params["w_ge"]), params["g_ge"], params["b_ge"]),
            T_local)
        gate = interp_nearest(
            jax.nn.sigmoid(gln(dwconv(global_features, params["w_gg"]),
                               params["g_gg"], params["b_gg"])), T_local)
    else:
        g_i = interp_nearest(global_features, T_local)
        global_emb = gln(dwconv(g_i, params["w_ge"]), params["g_ge"], params["b_ge"])
        gate = jax.nn.sigmoid(gln(dwconv(g_i, params["w_gg"]),
                                  params["g_gg"], params["b_gg"]))
    return local_emb * gate + global_emb


def _make_params(key, C, K):
    ks = jax.random.split(key, 9)
    w = lambda k: jax.random.normal(k, (C, K), jnp.float32) * 0.2
    g = lambda k: 1.0 + 0.1 * jax.random.normal(k, (C, 1), jnp.float32)
    b = lambda k: 0.1 * jax.random.normal(k, (C, 1), jnp.float32)
    return {"w_local": w(ks[0]), "w_ge": w(ks[1]), "w_gg": w(ks[2]),
            "g_local": g(ks[3]), "b_local": b(ks[4]),
            "g_ge": g(ks[5]), "b_ge": b(ks[6]),
            "g_gg": g(ks[7]), "b_gg": b(ks[8])}


if __name__ == "__main__":
    B, C, K = 2, 8, 5
    key = jax.random.PRNGKey(0)
    kp, kx = jax.random.split(key)
    params = _make_params(kp, C, K)

    # (T_local, T_global):
    #   gather mode: lane-dense single tile, tiny padded+masked, multi-tile, padded+masked
    #   upsample mode: integer ratio, non-integer ratio, padded output
    cases = [(128, 192), (32, 48), (1024, 1536), (200, 320),
             (256, 128), (384, 256), (200, 96)]
    for i, (T_local, T_global) in enumerate(cases):
        k0, k1 = jax.random.split(jax.random.fold_in(kx, i))
        local_features = jax.random.normal(k0, (B, C, T_local), jnp.float32)
        global_features = jax.random.normal(k1, (B, C, T_global), jnp.float32)

        out = jax.block_until_ready(
            injection_multi_sum(local_features, global_features, params))
        ref = _ref_forward(local_features, global_features, params)

        assert out.shape == (B, C, T_local), out.shape
        err = float(jnp.max(jnp.abs(out - ref)))
        assert jnp.allclose(out, ref, atol=1e-4, rtol=1e-4), (T_local, T_global, err)

    print("KERNEL_OK")
</pallas_src>

<mosaic_0001>
module attributes {stable_mosaic.version = 11 : i64} {
  func.func @_stats_kernel(%arg0: i32, %arg1: i32, %arg2: memref<1x8x128xf32, #tpu.memory_space<vmem>>, %arg3: memref<1x1x8x4xf32, #tpu.memory_space<vmem>>, %arg4: memref<1x8x128xf32, #tpu.memory_space<vmem>>, %arg5: memref<1x1x8x4xf32, #tpu.memory_space<vmem>>, %arg6: memref<8x15xf32, #tpu.memory_space<vmem>>, %arg7: memref<1x8x128xf32, #tpu.memory_space<vmem>>, %arg8: memref<8x132xf32, #tpu.memory_space<vmem>>, %arg9: memref<8x132xf32, #tpu.memory_space<vmem>>) attributes {dimension_semantics = [#tpu.dimension_semantics<parallel>, #tpu.dimension_semantics<arbitrary>], iteration_bounds = array<i64: 2, 1>, scalar_prefetch = 0 : i64, scratch_operands = 2 : i64, tpu.core_type = #tpu.core_type<tc>, window_params = [{transform_indices = @transform_0, window_bounds = array<i64: 1, 8, 128>}, {transform_indices = @transform_1, window_bounds = array<i64: 1, 1, 8, 4>}, {transform_indices = @transform_2, window_bounds = array<i64: 1, 8, 128>}, {transform_indices = @transform_3, window_bounds = array<i64: 1, 1, 8, 4>}, {pipeline_mode = #tpu.pipeline_mode<synchronous>, transform_indices = @transform_4, window_bounds = array<i64: 8, 15>}, {transform_indices = @transform_5, window_bounds = array<i64: 1, 8, 128>}]} {
    %c0 = arith.constant 0 : index
    %c0_0 = arith.constant 0 : index
    %c0_1 = arith.constant 0 : index
    %c0_2 = arith.constant 0 : index
    %0 = vector.load %arg3[%c0, %c0_0, %c0_1, %c0_2] : memref<1x1x8x4xf32, #tpu.memory_space<vmem>>, vector<1x1x8x2xf32>
    %1 = vector.shape_cast %0 : vector<1x1x8x2xf32> to vector<8x2xf32>
    %c0_3 = arith.constant 0 : index
    %c0_4 = arith.constant 0 : index
    %2 = vector.load %arg8[%c0_3, %c0_4] : memref<8x132xf32, #tpu.memory_space<vmem>>, vector<8x2xf32>
    tpu.vector_store %arg8[%c0_3, %c0_4], %1 {strides = array<i32>} : memref<8x132xf32, #tpu.memory_space<vmem>>, vector<8x2xf32>,
    %c0_5 = arith.constant 0 : index
    %c0_6 = arith.constant 0 : index
    %c0_7 = arith.constant 0 : index
    %c2 = arith.constant 2 : index
    %3 = vector.load %arg3[%c0_5, %c0_6, %c0_7, %c2] : memref<1x1x8x4xf32, #tpu.memory_space<vmem>>, vector<1x1x8x2xf32>
    %4 = vector.shape_cast %3 : vector<1x1x8x2xf32> to vector<8x2xf32>
    %c0_8 = arith.constant 0 : index
    %c130 = arith.constant 130 : index
    %5 = vector.load %arg8[%c0_8, %c130] : memref<8x132xf32, #tpu.memory_space<vmem>>, vector<8x2xf32>
    tpu.vector_store %arg8[%c0_8, %c130], %4 {strides = array<i32>} : memref<8x132xf32, #tpu.memory_space<vmem>>, vector<8x2xf32>,
    %c0_9 = arith.constant 0 : index
    %c0_10 = arith.constant 0 : index
    %c0_11 = arith.constant 0 : index
    %6 = vector.load %arg2[%c0_9, %c0_10, %c0_11] : memref<1x8x128xf32, #tpu.memory_space<vmem>>, vector<1x8x128xf32>
    %7 = vector.shape_cast %6 : vector<1x8x128xf32> to vector<8x128xf32>
    %c0_12 = arith.constant 0 : index
    %c2_13 = arith.constant 2 : index
    %8 = vector.load %arg8[%c0_12, %c2_13] : memref<8x132xf32, #tpu.memory_space<vmem>>, vector<8x128xf32>
    tpu.vector_store %arg8[%c0_12, %c2_13], %7 {strides = array<i32>} : memref<8x132xf32, #tpu.memory_space<vmem>>, vector<8x128xf32>,
    %c0_14 = arith.constant 0 : index
    %c0_15 = arith.constant 0 : index
    %c0_16 = arith.constant 0 : index
    %c0_17 = arith.constant 0 : index
    %9 = vector.load %arg5[%c0_14, %c0_15, %c0_16, %c0_17] : memref<1x1x8x4xf32, #tpu.memory_space<vmem>>, vector<1x1x8x2xf32>
    %10 = vector.shape_cast %9 : vector<1x1x8x2xf32> to vector<8x2xf32>
    %c0_18 = arith.constant 0 : index
    %c0_19 = arith.constant 0 : index
    %11 = vector.load %arg9[%c0_18, %c0_19] : memref<8x132xf32, #tpu.memory_space<vmem>>, vector<8x2xf32>
    tpu.vector_store %arg9[%c0_18, %c0_19], %10 {strides = array<i32>} : memref<8x132xf32, #tpu.memory_space<vmem>>, vector<8x2xf32>,
    %c0_20 = arith.constant 0 : index
    %c0_21 = arith.constant 0 : index
    %c0_22 = arith.constant 0 : index
    %c2_23 = arith.constant 2 : index
    %12 = vector.load %arg5[%c0_20, %c0_21, %c0_22, %c2_23] : memref<1x1x8x4xf32, #tpu.memory_space<vmem>>, vector<1x1x8x2xf32>
    %13 = vector.shape_cast %12 : vector<1x1x8x2xf32> to vector<8x2xf32>
    %c0_24 = arith.constant 0 : index
    %c130_25 = arith.constant 130 : index
    %14 = vector.load %arg9[%c0_24, %c130_25] : memref<8x132xf32, #tpu.memory_space<vmem>>, vector<8x2xf32>
    tpu.vector_store %arg9[%c0_24, %c130_25], %13 {strides = array<i32>} : memref<8x132xf32, #tpu.memory_space<vmem>>, vector<8x2xf32>,
    %c0_26 = arith.constant 0 : index
    %c0_27 = arith.constant 0 : index
    %c0_28 = arith.constant 0 : index
    %15 = vector.load %arg4[%c0_26, %c0_27, %c0_28] : memref<1x8x128xf32, #tpu.memory_space<vmem>>, vector<1x8x128xf32>
    %16 = vector.shape_cast %15 : vector<1x8x128xf32> to vector<8x128xf32>
    %c0_29 = arith.constant 0 : index
    %c2_30 = arith.constant 2 : index
    %17 = vector.load %arg9[%c0_29, %c2_30] : memref<8x132xf32, #tpu.memory_space<vmem>>, vector<8x128xf32>
    tpu.vector_store %arg9[%c0_29, %c2_30], %16 {strides = array<i32>} : memref<8x132xf32, #tpu.memory_space<vmem>>, vector<8x128xf32>,
    %c0_31 = arith.constant 0 : index
    %c0_32 = arith.constant 0 : index
    %18 = vector.load %arg6[%c0_31, %c0_32] : memref<8x15xf32, #tpu.memory_space<vmem>>, vector<8x15xf32>
    %19 = vector.extract_strided_slice %18 {offsets = [0, 0], sizes = [8, 5], strides = [1, 1]} : vector<8x15xf32> to vector<8x5xf32>
    %20 = vector.extract_strided_slice %19 {offsets = [0, 0], sizes = [8, 1], strides = [1, 1]} : vector<8x5xf32> to vector<8x1xf32>
    %c0_33 = arith.constant 0 : index
    %c0_34 = arith.constant 0 : index
    %21 = vector.load %arg8[%c0_33, %c0_34] : memref<8x132xf32, #tpu.memory_space<vmem>>, vector<8x128xf32>
    %22 = vector.broadcast %20 : vector<8x1xf32> to vector<8x128xf32>
    %23 = arith.mulf %22, %21 : vector<8x128xf32>
    %24 = vector.extract_strided_slice %19 {offsets = [0, 1], sizes = [8, 1], strides = [1, 1]} : vector<8x5xf32> to vector<8x1xf32>
    %c0_35 = arith.constant 0 : index
    %c1 = arith.constant 1 : index
    %25 = vector.load %arg8[%c0_35, %c1] : memref<8x132xf32, #tpu.memory_space<vmem>>, vector<8x128xf32>
    %26 = vector.broadcast %24 : vector<8x1xf32> to vector<8x128xf32>
    %27 = arith.mulf %26, %25 : vector<8x128xf32>
    %28 = arith.addf %23, %27 : vector<8x128xf32>
    %29 = vector.extract_strided_slice %19 {offsets = [0, 2], sizes = [8, 1], strides = [1, 1]} : vector<8x5xf32> to vector<8x1xf32>
    %c0_36 = arith.constant 0 : index
    %c2_37 = arith.constant 2 : index
    %30 = vector.load %arg8[%c0_36, %c2_37] : memref<8x132xf32, #tpu.memory_space<vmem>>, vector<8x128xf32>
    %31 = vector.broadcast %29 : vector<8x1xf32> to vector<8x128xf32>
    %32 = arith.mulf %31, %30 : vector<8x128xf32>
    %33 = arith.addf %28, %32 : vector<8x128xf32>
    %34 = vector.extract_strided_slice %19 {offsets = [0, 3], sizes = [8, 1], strides = [1, 1]} : vector<8x5xf32> to vector<8x1xf32>
    %c0_38 = arith.constant 0 : index
    %c3 = arith.constant 3 : index
    %35 = vector.load %arg8[%c0_38, %c3] : memref<8x132xf32, #tpu.memory_space<vmem>>, vector<8x128xf32>
    %36 = vector.broadcast %34 : vector<8x1xf32> to vector<8x128xf32>
    %37 = arith.mulf %36, %35 : vector<8x128xf32>
    %38 = arith.addf %33, %37 : vector<8x128xf32>
    %39 = vector.extract_strided_slice %19 {offsets = [0, 4], sizes = [8, 1], strides = [1, 1]} : vector<8x5xf32> to vector<8x1xf32>
    %c0_39 = arith.constant 0 : index
    %c4 = arith.constant 4 : index
    %40 = vector.load %arg8[%c0_39, %c4] : memref<8x132xf32, #tpu.memory_space<vmem>>, vector<8x128xf32>
    %41 = vector.broadcast %39 : vector<8x1xf32> to vector<8x128xf32>
    %42 = arith.mulf %41, %40 : vector<8x128xf32>
    %43 = arith.addf %38, %42 : vector<8x128xf32>
    %44 = vector.extract_strided_slice %18 {offsets = [0, 5], sizes = [8, 5], strides = [1, 1]} : vector<8x15xf32> to vector<8x5xf32>
    %45 = vector.extract_strided_slice %44 {offsets = [0, 0], sizes = [8, 1], strides = [1, 1]} : vector<8x5xf32> to vector<8x1xf32>
    %c0_40 = arith.constant 0 : index
    %c0_41 = arith.constant 0 : index
    %46 = vector.load %arg9[%c0_40, %c0_41] : memref<8x132xf32, #tpu.memory_space<vmem>>, vector<8x128xf32>
    %47 = vector.broadcast %45 : vector<8x1xf32> to vector<8x128xf32>
    %48 = arith.mulf %47, %46 : vector<8x128xf32>
    %49 = vector.extract_strided_slice %44 {offsets = [0, 1], sizes = [8, 1], strides = [1, 1]} : vector<8x5xf32> to vector<8x1xf32>
    %c0_42 = arith.constant 0 : index
    %c1_43 = arith.constant 1 : index
    %50 = vector.load %arg9[%c0_42, %c1_43] : memref<8x132xf32, #tpu.memory_space<vmem>>, vector<8x128xf32>
    %51 = vector.broadcast %49 : vector<8x1xf32> to vector<8x128xf32>
    %52 = arith.mulf %51, %50 : vector<8x128xf32>
    %53 = arith.addf %48, %52 : vector<8x128xf32>
    %54 = vector.extract_strided_slice %44 {offsets = [0, 2], sizes = [8, 1], strides = [1, 1]} : vector<8x5xf32> to vector<8x1xf32>
    %c0_44 = arith.constant 0 : index
    %c2_45 = arith.constant 2 : index
    %55 = vector.load %arg9[%c0_44, %c2_45] : memref<8x132xf32, #tpu.memory_space<vmem>>, vector<8x128xf32>
    %56 = vector.broadcast %54 : vector<8x1xf32> to vector<8x128xf32>
    %57 = arith.mulf %56, %55 : vector<8x128xf32>
    %58 = arith.addf %53, %57 : vector<8x128xf32>
    %59 = vector.extract_strided_slice %44 {offsets = [0, 3], sizes = [8, 1], strides = [1, 1]} : vector<8x5xf32> to vector<8x1xf32>
    %c0_46 = arith.constant 0 : index
    %c3_47 = arith.constant 3 : index
    %60 = vector.load %arg9[%c0_46, %c3_47] : memref<8x132xf32, #tpu.memory_space<vmem>>, vector<8x128xf32>
    %61 = vector.broadcast %59 : vector<8x1xf32> to vector<8x128xf32>
    %62 = arith.mulf %61, %60 : vector<8x128xf32>
    %63 = arith.addf %58, %62 : vector<8x128xf32>
    %64 = vector.extract_strided_slice %44 {offsets = [0, 4], sizes = [8, 1], strides = [1, 1]} : vector<8x5xf32> to vector<8x1xf32>
    %c0_48 = arith.constant 0 : index
    %c4_49 = arith.constant 4 : index
    %65 = vector.load %arg9[%c0_48, %c4_49] : memref<8x132xf32, #tpu.memory_space<vmem>>, vector<8x128xf32>
    %66 = vector.broadcast %64 : vector<8x1xf32> to vector<8x128xf32>
    %67 = arith.mulf %66, %65 : vector<8x128xf32>
    %68 = arith.addf %63, %67 : vector<8x128xf32>
    %69 = vector.extract_strided_slice %18 {offsets = [0, 10], sizes = [8, 5], strides = [1, 1]} : vector<8x15xf32> to vector<8x5xf32>
    %70 = vector.extract_strided_slice %69 {offsets = [0, 0], sizes = [8, 1], strides = [1, 1]} : vector<8x5xf32> to vector<8x1xf32>
    %c0_50 = arith.constant 0 : index
    %c0_51 = arith.constant 0 : index
    %71 = vector.load %arg9[%c0_50, %c0_51] : memref<8x132xf32, #tpu.memory_space<vmem>>, vector<8x128xf32>
    %72 = vector.broadcast %70 : vector<8x1xf32> to vector<8x128xf32>
    %73 = arith.mulf %72, %71 : vector<8x128xf32>
    %74 = vector.extract_strided_slice %69 {offsets = [0, 1], sizes = [8, 1], strides = [1, 1]} : vector<8x5xf32> to vector<8x1xf32>
    %c0_52 = arith.constant 0 : index
    %c1_53 = arith.constant 1 : index
    %75 = vector.load %arg9[%c0_52, %c1_53] : memref<8x132xf32, #tpu.memory_space<vmem>>, vector<8x128xf32>
    %76 = vector.broadcast %74 : vector<8x1xf32> to vector<8x128xf32>
    %77 = arith.mulf %76, %75 : vector<8x128xf32>
    %78 = arith.addf %73, %77 : vector<8x128xf32>
    %79 = vector.extract_strided_slice %69 {offsets = [0, 2], sizes = [8, 1], strides = [1, 1]} : vector<8x5xf32> to vector<8x1xf32>
    %c0_54 = arith.constant 0 : index
    %c2_55 = arith.constant 2 : index
    %80 = vector.load %arg9[%c0_54, %c2_55] : memref<8x132xf32, #tpu.memory_space<vmem>>, vector<8x128xf32>
    %81 = vector.broadcast %79 : vector<8x1xf32> to vector<8x128xf32>
    %82 = arith.mulf %81, %80 : vector<8x128xf32>
    %83 = arith.addf %78, %82 : vector<8x128xf32>
    %84 = vector.extract_strided_slice %69 {offsets = [0, 3], sizes = [8, 1], strides = [1, 1]} : vector<8x5xf32> to vector<8x1xf32>
    %c0_56 = arith.constant 0 : index
    %c3_57 = arith.constant 3 : index
    %85 = vector.load %arg9[%c0_56, %c3_57] : memref<8x132xf32, #tpu.memory_space<vmem>>, vector<8x128xf32>
    %86 = vector.broadcast %84 : vector<8x1xf32> to vector<8x128xf32>
    %87 = arith.mulf %86, %85 : vector<8x128xf32>
    %88 = arith.addf %83, %87 : vector<8x128xf32>
    %89 = vector.extract_strided_slice %69 {offsets = [0, 4], sizes = [8, 1], strides = [1, 1]} : vector<8x5xf32> to vector<8x1xf32>
    %c0_58 = arith.constant 0 : index
    %c4_59 = arith.constant 4 : index
    %90 = vector.load %arg9[%c0_58, %c4_59] : memref<8x132xf32, #tpu.memory_space<vmem>>, vector<8x128xf32>
    %91 = vector.broadcast %89 : vector<8x1xf32> to vector<8x128xf32>
    %92 = arith.mulf %91, %90 : vector<8x128xf32>
    %93 = arith.addf %88, %92 : vector<8x128xf32>
    %94 = vector.shape_cast %43 : vector<8x128xf32> to vector<1x8x128xf32>
    %cst = arith.constant dense<0.000000e+00> : vector<1xf32>
    %95 = vector.multi_reduction <add>, %94, %cst [1, 2] : vector<1x8x128xf32> to vector<1xf32>
    %96 = vector.shape_cast %95 : vector<1xf32> to vector<1x1x1xf32>
    %97 = vector.extract %96[0, 0, 0] : f32 from vector<1x1x1xf32>
    %98 = arith.mulf %43, %43 : vector<8x128xf32>
    %99 = vector.shape_cast %98 : vector<8x128xf32> to vector<1x8x128xf32>
    %cst_60 = arith.constant dense<0.000000e+00> : vector<1xf32>
    %100 = vector.multi_reduction <add>, %99, %cst_60 [1, 2] : vector<1x8x128xf32> to vector<1xf32>
    %101 = vector.shape_cast %100 : vector<1xf32> to vector<1x1x1xf32>
    %102 = vector.extract %101[0, 0, 0] : f32 from vector<1x1x1xf32>
    %103 = vector.shape_cast %68 : vector<8x128xf32> to vector<1x8x128xf32>
    %cst_61 = arith.constant dense<0.000000e+00> : vector<1xf32>
    %104 = vector.multi_reduction <add>, %103, %cst_61 [1, 2] : vector<1x8x128xf32> to vector<1xf32>
    %105 = vector.shape_cast %104 : vector<1xf32> to vector<1x1x1xf32>
    %106 = vector.extract %105[0, 0, 0] : f32 from vector<1x1x1xf32>
    %107 = arith.mulf %68, %68 : vector<8x128xf32>
    %108 = vector.shape_cast %107 : vector<8x128xf32> to vector<1x8x128xf32>
    %cst_62 = arith.constant dense<0.000000e+00> : vector<1xf32>
    %109 = vector.multi_reduction <add>, %108, %cst_62 [1, 2] : vector<1x8x128xf32> to vector<1xf32>
    %110 = vector.shape_cast %109 : vector<1xf32> to vector<1x1x1xf32>
    %111 = vector.extract %110[0, 0, 0] : f32 from vector<1x1x1xf32>
    %112 = vector.shape_cast %93 : vector<8x128xf32> to vector<1x8x128xf32>
    %cst_63 = arith.constant dense<0.000000e+00> : vector<1xf32>
    %113 = vector.multi_reduction <add>, %112, %cst_63 [1, 2] : vector<1x8x128xf32> to vector<1xf32>
    %114 = vector.shape_cast %113 : vector<1xf32> to vector<1x1x1xf32>
    %115 = vector.extract %114[0, 0, 0] : f32 from vector<1x1x1xf32>
    %116 = arith.mulf %93, %93 : vector<8x128xf32>
    %117 = vector.shape_cast %116 : vector<8x128xf32> to vector<1x8x128xf32>
    %cst_64 = arith.constant dense<0.000000e+00> : vector<1xf32>
    %118 = vector.multi_reduction <add>, %117, %cst_64 [1, 2] : vector<1x8x128xf32> to vector<1xf32>
    %119 = vector.shape_cast %118 : vector<1xf32> to vector<1x1x1xf32>
    %120 = vector.extract %119[0, 0, 0] : f32 from vector<1x1x1xf32>
    %cst_65 = arith.constant 1.000000e+00 : f32
    %121 = vector.broadcast %cst_65 : f32 to vector<1x128xf32>
    %122 = vector.broadcast %97 : f32 to vector<1x128xf32>
    %123 = arith.mulf %122, %121 : vector<1x128xf32>
    %124 = vector.broadcast %102 : f32 to vector<1x128xf32>
    %125 = arith.mulf %124, %121 : vector<1x128xf32>
    %126 = vector.broadcast %106 : f32 to vector<1x128xf32>
    %127 = arith.mulf %126, %121 : vector<1x128xf32>
    %128 = vector.broadcast %111 : f32 to vector<1x128xf32>
    %129 = arith.mulf %128, %121 : vector<1x128xf32>
    %130 = vector.broadcast %115 : f32 to vector<1x128xf32>
    %131 = arith.mulf %130, %121 : vector<1x128xf32>
    %132 = vector.broadcast %120 : f32 to vector<1x128xf32>
    %133 = arith.mulf %132, %121 : vector<1x128xf32>
    %cst_66 = arith.constant 0.000000e+00 : f32
    %134 = vector.broadcast %cst_66 : f32 to vector<2x128xf32>
    %135 = tpu.concatenate %123, %125, %127, %129, %131, %133, %134 in 0 : vector<1x128xf32>, vector<1x128xf32>, vector<1x128xf32>, vector<1x128xf32>, vector<1x128xf32>, vector<1x128xf32>, vector<2x128xf32> -> vector<8x128xf32>
    %c0_i32 = arith.constant 0 : i32
    %136 = arith.cmpi eq, %arg1, %c0_i32 : i32
    %137 = arith.extui %136 : i1 to i32
    %c0_i32_67 = arith.constant 0 : i32
    %138 = arith.cmpi ne, %137, %c0_i32_67 : i32
    scf.if %138 {
      %c0_70 = arith.constant 0 : index
      %c0_71 = arith.constant 0 : index
      %c0_72 = arith.constant 0 : index
      %142 = vector.load %arg7[%c0_70, %c0_71, %c0_72] : memref<1x8x128xf32, #tpu.memory_space<vmem>>, vector<1x8x128xf32>
      %143 = vector.shape_cast %142 : vector<1x8x128xf32> to vector<8x128xf32>
      %144 = vector.shape_cast %135 : vector<8x128xf32> to vector<1x8x128xf32>
      tpu.vector_store %arg7[%c0_70, %c0_71, %c0_72], %144 {strides = array<i32>} : memref<1x8x128xf32, #tpu.memory_space<vmem>>, vector<1x8x128xf32>,
    } else {
    }
    %c0_i32_68 = arith.constant 0 : i32
    %139 = arith.cmpi sgt, %arg1, %c0_i32_68 : i32
    %140 = arith.extui %139 : i1 to i32
    %c0_i32_69 = arith.constant 0 : i32
    %141 = arith.cmpi ne, %140, %c0_i32_69 : i32
    scf.if %141 {
      %c0_70 = arith.constant 0 : index
      %c0_71 = arith.constant 0 : index
      %c0_72 = arith.constant 0 : index
      %142 = vector.load %arg7[%c0_70, %c0_71, %c0_72] : memref<1x8x128xf32, #tpu.memory_space<vmem>>, vector<1x8x128xf32>
      %143 = vector.shape_cast %142 : vector<1x8x128xf32> to vector<8x128xf32>
      %144 = arith.addf %143, %135 : vector<8x128xf32>
      %c0_73 = arith.constant 0 : index
      %c0_74 = arith.constant 0 : index
      %c0_75 = arith.constant 0 : index
      %145 = vector.load %arg7[%c0_73, %c0_74, %c0_75] : memref<1x8x128xf32, #tpu.memory_space<vmem>>, vector<1x8x128xf32>
      %146 = vector.shape_cast %145 : vector<1x8x128xf32> to vector<8x128xf32>
      %147 = vector.shape_cast %144 : vector<8x128xf32> to vector<1x8x128xf32>
      tpu.vector_store %arg7[%c0_73, %c0_74, %c0_75], %147 {strides = array<i32>} : memref<1x8x128xf32, #tpu.memory_space<vmem>>, vector<1x8x128xf32>,
    } else {
    }
    return
  }
  func.func @transform_0(%arg0: i32, %arg1: i32) -> (i32, i32, i32) {
    %c0_i32 = arith.constant 0 : i32
    %c0_i32_0 = arith.constant 0 : i32
    return %arg0, %c0_i32, %arg1 : i32, i32, i32
  }
  func.func @transform_1(%arg0: i32, %arg1: i32) -> (i32, i32, i32, i32) {
    %c0_i32 = arith.constant 0 : i32
    %c0_i32_0 = arith.constant 0 : i32
    %c0_i32_1 = arith.constant 0 : i32
    return %arg0, %arg1, %c0_i32, %c0_i32_0 : i32, i32, i32, i32
  }
  func.func @transform_2(%arg0: i32, %arg1: i32) -> (i32, i32, i32) {
    %c0_i32 = arith.constant 0 : i32
    %c0_i32_0 = arith.constant 0 : i32
    return %arg0, %c0_i32, %arg1 : i32, i32, i32
  }
  func.func @transform_3(%arg0: i32, %arg1: i32) -> (i32, i32, i32, i32) {
    %c0_i32 = arith.constant 0 : i32
    %c0_i32_0 = arith.constant 0 : i32
    %c0_i32_1 = arith.constant 0 : i32
    return %arg0, %arg1, %c0_i32, %c0_i32_0 : i32, i32, i32, i32
  }
  func.func @transform_4(%arg0: i32, %arg1: i32) -> (i32, i32) {
    %c0_i32 = arith.constant 0 : i32
    %c0_i32_0 = arith.constant 0 : i32
    %c0_i32_1 = arith.constant 0 : i32
    return %c0_i32, %c0_i32_0 : i32, i32
  }
  func.func @transform_5(%arg0: i32, %arg1: i32) -> (i32, i32, i32) {
    %c0_i32 = arith.constant 0 : i32
    %c0_i32_0 = arith.constant 0 : i32
    %c0_i32_1 = arith.constant 0 : i32
    return %arg0, %c0_i32, %c0_i32_0 : i32, i32, i32
  }
}

</mosaic_0001>

<bundles_post_ra>
// kernel: tpu_custom_call.1
= control target key start
LH: loop header
LB: loop body
LE: loop exit
PB: predicated region body
PF: predicated region fallthrough
CT: control target
= control target key end

     0   :  { %10 = vsyncpa [#allocation5], 0  ;;  %s1221_s0 = inlined_call_operand.vmem [shape: f32[2,8,128], index: 0, kind: input, shape index: {}]   ;;  %s1222_s1 = inlined_call_operand.vmem [shape: f32[2,1,8,4], index: 1, kind: input, shape index: {}]   ;;  %s1223_s2 = inlined_call_operand.vmem [shape: f32[2,8,128], index: 2, kind: input, shape index: {}]   ;;  %s1224_s3 = inlined_call_operand.vmem [shape: f32[2,1,8,4], index: 3, kind: input, shape index: {}]   ;;  %s1225_s4 = inlined_call_operand.vmem [shape: f32[8,15], index: 4, kind: input, shape index: {}]   ;;  %s1226_s5 = inlined_call_operand.hbm [shape: f32[2,8,128], index: 5, kind: output, shape index: {}]  }
   0x1   :  { %12 = vsyncpa [#allocation5 + $0x1], 0  ;;  %s1023_s18 = smov 0   ;;  %s1025_s19 = smov 0  }
   0x2   :  { %s1027_s20 = smov 0   ;;  %s1029_s21 = smov 0  }
   0x3   :  { %s1031_s22 = smov 0   ;;  %s1033_s23 = smov 0  }
   0x4 LB: > { %s775_s24 = sadd.s32 4294967295, %s970_s23   ;;  %s776_s25 = sadd.s32 4294967294, %s970_s23   ;;  %s970_s23 = sphi %s1033_s23, %s18_s23   ;;  %s966_s22 = sphi %s1031_s22, %s1233_s22   ;;  %s962_s21 = sphi %s1029_s21, %s1232_s21   ;;  %s958_s20 = sphi %s1027_s20, %s1231_s20   ;;  %s954_s19 = sphi %s1025_s19, %s1230_s19   ;;  %s950_s18 = sphi %s1023_s18, %s1229_s18  }
   0x5   : > { %s30_s26 = sadd.s32 1, %s966_s22  ;;  %s170_s27 = sadd.s32 1, %s958_s20 }
   0x6   : > { %p32_p0 = scmp.ge.s32.totalorder %s30_s26, 2  ;;  %p180_p1 = scmp.ne.s32.totalorder %s958_s20, %s954_s19 }
   0x7   : > { %p181_p2 = scmp.eq.s32.totalorder %s775_s24, 1  ;;  %p186_p3 = scmp.ne.s32.totalorder %s954_s19, %s950_s18 }
   0x8   : > { %s1235_s26 = smov (%p32_p0, %s30_s26), 0  ;;  %p187_p5 = scmp.eq.s32.totalorder %s776_s25, 1 }
   0x9   : > { %p1063_p4 = por %p181_p2, %p180_p1  ;;  %s167_s29 = ssub.s32 %s966_s22, %s1235_s26 }
   0xa   : > { %p779_p6 = scmp.ge.s32.totalorder %s970_s23, 1  ;;  %p168_p7 = scmp.eq.s32.totalorder %s167_s29, 0 }
   0xb   : > { %p1070_p8 = por %p187_p5, %p186_p3  ;;  %p248_p9 = scmp.lt.s32.totalorder %s970_s23, 3 }
   0xc   : > { %s1076_s6 = scalar_select %p168_p7, %s958_s20, %s170_s27  }
   0xd   : > { %p249_p10 = pnand %p779_p6, %p248_p9 }
   0xe   : > { %v1081_v0 = vld [vmem:[%s1225_s4] sm:$0xff] (!%p249_p10)  ;;  %p299_p11 = scmp.lt.s32.totalorder (!%p249_p10), %s962_s21, 1  ;;  %v972_v1 = vmov (!%p249_p10), 2   ;;  %v973_v2 = vmov (!%p249_p10), 1   ;;  %vm328_vm0 = vcmask (!%p249_p10), 15360   ;;  %vm331_vm1 = vcmask (!%p249_p10), 31760  }
   0xf   : > { %252 = sbr.rel (%p249_p10) target bundleno = 547 (0x223), region = 40  ;;  %877 = vset.pattern.permute.xlu1 (!%p249_p10), %v972_v1  ;;  %876 = vset.pattern.permute.xlu0 (!%p249_p10), %v973_v2  ;;  %v974_v5 = vmov (!%p249_p10), 6   ;;  %s975_s8 = smov (!%p249_p10), 2   ;;  %v976_v8 = vmov (!%p249_p10), 7   ;;  %v977_v9 = vmov (!%p249_p10), 3   ;;  %v978_v10 = vmov (!%p249_p10), 11  }
  0x10   : > { %379 = vperm.xlu1 (!%p249_p10), %877, %v1081_v0   ;;  %v979_v11 = vmov (!%p249_p10), 4   ;;  %v980_v12 = vmov (!%p249_p10), 8   ;;  %v981_v13 = vmov (!%p249_p10), 9   ;;  %v982_v14 = vmov (!%p249_p10), 12   ;;  %s990_s11 = smov (!%p249_p10), 125   ;;  %s991_s12 = smov (!%p249_p10), 124  }
  0x11   : > { %v983_v15 = vmov (!%p249_p10), 0   ;;  %v984_v16 = vmov (!%p249_p10), 13   ;;  %v985_v17 = vmov (!%p249_p10), 14   ;;  %v986_v18 = vmov (!%p249_p10), 5   ;;  %s296_s14 = sand.u32 (!%p249_p10), 1, %s954_s19   ;;  %s786_s27 = sshll.u32 (!%p249_p10), %s962_s21, 7 }
  0x12   : > { %v987_v19 = vmov (!%p249_p10), 10   ;;  %vm338_vm2 = vcmask (!%p249_p10), 1047568   ;;  %vm374_vm3 = vcmask (!%p249_p10), 1039360   ;;  %vm390_vm4 = vcmask (!%p249_p10), 1031168   ;;  %s780_s17 = sshll.u32 (!%p249_p10), %s296_s14, 3 }
  0x13   : > { %vm406_vm5 = vcmask (!%p249_p10), 1022976   ;;  %vm422_vm6 = vcmask (!%p249_p10), 1014784   ;;  %vm622_vm7 = vcmask (!%p249_p10), 1040384   ;;  %vm624_vm8 = vcmask (!%p249_p10), 1041408   ;;  %s298_s29 = scalar_lea.vmem (!%p249_p10), [#allocation4], %s780_s17 }
  0x14   : > { %878 = vset.pattern.permute.xlu1 (!%p249_p10), %v974_v5  ;;  %vm626_vm9 = vcmask (!%p249_p10), 1042432   ;;  %vm628_vm10 = vcmask (!%p249_p10), 1043456   ;;  %vm630_vm11 = vcmask (!%p249_p10), 1044480   ;;  %vm632_vm12 = vcmask (!%p249_p10), 1045504  }
  0x16   : > { %s300_s9 = scalar_select %p299_p11, %s962_s21, 1 }
  0x17   : > { %s647_s21 = scalar_lea.sflag [#allocation5], %s296_s14 }
  0x18   : > { %s781_s10 = sshll.u32 %s300_s9, 3  ;;  %s988_s9 = smov 127  }
  0x19   : > { %s319_s13 = scalar_lea.vmem %s1223_s2, %s781_s10  ;;  %s305_s16 = scalar_lea.vmem %s1221_s0, %s781_s10 }
  0x1a   : > { %v345_v3 = vld [vmem:[%s319_s13] sm:$0xff]  ;;  %s312_s25 = scalar_lea.vmem %s1222_s1, %s781_s10  ;;  %s326_s7 = scalar_lea.vmem %s1224_s3, %s781_s10 }
  0x1b   : > { %v333_v4 = vld [vmem:[%s305_s16] sm:$0xff]  ;;  %347 = vrot.lane.b32.xlu1 %v345_v3, %s975_s8  ;;  %s989_s10 = smov 126  }
  0x1c   : > { %335 = vrot.lane.b32.xlu0 %v333_v4, %s975_s8  ;;  %v327_v6 = vld [vmem:[%s312_s25] sm:$0xff] }
  0x1d   : > { %v341_v7 = vld [vmem:[%s326_s7] sm:$0xff]  ;;  %329 = vst.msk [vmem:[#allocation2] sm:$0xff] %vm328_vm0, %v327_v6  ;;  %s660_s7 = sshll.u32 %s298_s29, 4  ;;  %s1174_s7 = int_to_ptr.vmem [resolvable:$true] %s660_s7 }
  0x1e   : > { %332 = vst.msk [vmem:[#allocation2 + $0x8] sm:$0xff] %vm331_vm1, %v327_v6  ;;  %344 = vst.msk [vmem:[#allocation3 + $0x8] sm:$0xff] %vm331_vm1, %v341_v7 }
  0x1f   : > { %342 = vst.msk [vmem:[#allocation3] sm:$0xff] %vm328_vm0, %v341_v7  ;;  %435 = vperm.xlu1 %878, %v1081_v0  }
  0x20   : > { %363 = vperm.xlu0 %876, %v1081_v0  }
  0x23   : > { %880 = vset.pattern.permute.xlu1 %v976_v8 }
  0x24   : > { %879 = vset.pattern.permute.xlu0 %v977_v9  ;;  %450 = vperm.xlu1 %880, %v1081_v0  }
  0x25   : > { %395 = vperm.xlu0 %879, %v1081_v0  }
  0x28   : > { %881 = vset.pattern.permute.xlu1 %v978_v10 }
  0x29   : > { %882 = vset.pattern.permute.xlu0 %v979_v11  ;;  %500 = vperm.xlu1 %881, %v1081_v0  }
  0x2a   : > { %411 = vperm.xlu0 %882, %v1081_v0  }
  0x2d   : > { %883 = vset.pattern.permute.xlu1 %v980_v12 }
  0x2e   : > { %885 = vset.pattern.permute.xlu0 %v981_v13  ;;  %465 = vperm.xlu1 %883, %v1081_v0  }
  0x2f   : > { %480 = vperm.xlu0 %885, %v1081_v0  }
  0x32   : > { %884 = vset.pattern.permute.xlu1 %v982_v14 }
  0x33   : > { %888 = vset.pattern.permute.xlu0 %v983_v15  ;;  %515 = vperm.xlu1 %884, %v1081_v0  }
  0x34   : > { %356 = vperm.xlu0 %888, %v1081_v0  }
  0x37   : > { %886 = vset.pattern.permute.xlu1 %v984_v16 }
  0x38   : > { %891 = vset.pattern.permute.xlu0 %v985_v17  ;;  %530 = vperm.xlu1 %886, %v1081_v0  }
  0x3c   : > { %887 = vset.pattern.permute.xlu1 %v985_v17 }
  0x3d   : > { %545 = vperm.xlu1 %887, %v1081_v0  }
  0x41   : > { %889 = vset.pattern.permute.xlu1 %v986_v18 }
  0x42   : > { %428 = vperm.xlu1 %889, %v1081_v0  }
  0x46   : > { %890 = vset.pattern.permute.xlu1 %v987_v19 }
  0x47   : > { %495 = vperm.xlu1 %890, %v1081_v0  }
  0x8e   : > { %v336_v20 = vpop.permute.xlu0 %335 }
  0x8f   : > { %339 = vst.msk [vmem:[#allocation2] sm:$0xff] %vm338_vm2, %v336_v20  ;;  %v380_v21 = vpop.permute.xlu1 %379 }
  0x90   : > { %340 = vst.msk [vmem:[#allocation2 + $0x8] sm:$0xff] %vm328_vm0, %v336_v20 }
  0x93   : > { %v348_v22 = vpop.permute.xlu1 %347 }
  0x94   : > { %350 = vst.msk [vmem:[#allocation3] sm:$0xff] %vm338_vm2, %v348_v22 }
  0x95   : > { %351 = vst.msk [vmem:[#allocation3 + $0x8] sm:$0xff] %vm328_vm0, %v348_v22 }
  0x96   : > { %v1116_v23 = vld [vmem:[#allocation2] sm:$0xff] }
  0x97   : > { %v361_v24 = vld [vmem:[#allocation2 + $0x8] sm:$0xff]  ;;  %v382_v28 = vmul.f32 %v380_v21, %v1116_v23 }
  0x98   : > { %v383_v29 = vmul.f32 %v380_v21, %v361_v24 }
  0x9b   : > { %v1122_v32 = vld [vmem:[#allocation3] sm:$0xff] }
  0x9c   : > { %v433_v30 = vld [vmem:[#allocation3 + $0x8] sm:$0xff] }
  0x9e   : > { %v436_v31 = vpop.permute.xlu1 %435 }
  0x9f   : > { %v364_v25 = vpop.permute.xlu0 %363  ;;  %v439_v33 = vmul.f32 %v436_v31, %v433_v30  ;;  %v438_v34 = vmul.f32 %v436_v31, %v1122_v32 }
  0xa0   : > { %v366_v26 = vmul.f32 %v364_v25, %v1116_v23  ;;  %v367_v27 = vmul.f32 %v364_v25, %v361_v24 }
  0xa2   : > { %372 = vrot.lane.b32.xlu1 %v367_v27, %s988_s9  ;;  %370 = vrot.lane.b32.xlu0 %v366_v26, %s988_s9 }
  0xa3   : > { %v451_v36 = vpop.permute.xlu1 %450 }
  0xa4   : > { %v396_v35 = vpop.permute.xlu0 %395  ;;  %v454_v39 = vmul.f32 %v451_v36, %v433_v30  ;;  %v453_v40 = vmul.f32 %v451_v36, %v1122_v32 }
  0xa5   : > { %v399_v37 = vmul.f32 %v396_v35, %v361_v24  ;;  %v398_v38 = vmul.f32 %v396_v35, %v1116_v23 }
  0xa6   : > { %388 = vrot.lane.b32.xlu1 %v383_v29, %s989_s10  ;;  %386 = vrot.lane.b32.xlu0 %v382_v28, %s989_s10 }
  0xa8   : > { %v501_v41 = vpop.permute.xlu1 %500 }
  0xa9   : > { %v504_v42 = vmul.f32 %v501_v41, %v433_v30  ;;  %v503_v43 = vmul.f32 %v501_v41, %v1122_v32  ;;  %v412_v44 = vpop.permute.xlu0 %411 }
  0xaa   : > { %444 = vrot.lane.b32.xlu1 %v439_v33, %s988_s9  ;;  %442 = vrot.lane.b32.xlu0 %v438_v34, %s988_s9  ;;  %v415_v46 = vmul.f32 %v412_v44, %v361_v24  ;;  %v414_v47 = vmul.f32 %v412_v44, %v1116_v23 }
  0xad   : > { %v466_v45 = vpop.permute.xlu1 %465 }
  0xae   : > { %404 = vrot.lane.b32.xlu1 %v399_v37, %s990_s11  ;;  %402 = vrot.lane.b32.xlu0 %v398_v38, %s990_s11  ;;  %v469_v48 = vmul.f32 %v466_v45, %v433_v30  ;;  %v468_v49 = vmul.f32 %v466_v45, %v1122_v32  ;;  %v481_v52 = vpop.permute.xlu0 %480 }
  0xaf   : > { %v484_v55 = vmul.f32 %v481_v52, %v433_v30  ;;  %v483_v56 = vmul.f32 %v481_v52, %v1122_v32 }
  0xb2   : > { %459 = vrot.lane.b32.xlu1 %v454_v39, %s989_s10  ;;  %457 = vrot.lane.b32.xlu0 %v453_v40, %s989_s10  ;;  %v516_v50 = vpop.permute.xlu1 %515 }
  0xb3   : > { %v519_v51 = vmul.f32 %v516_v50, %v433_v30  ;;  %v518_v53 = vmul.f32 %v516_v50, %v1122_v32  ;;  %v357_v63 = vpop.permute.xlu0 %356 }
  0xb4   : > { %v359_v12 = vmul.f32 %v1116_v23, %v357_v63 }
  0xb6   : > { %509 = vrot.lane.b32.xlu1 %v504_v42, %s988_s9  ;;  %507 = vrot.lane.b32.xlu0 %v503_v43, %s988_s9 }
  0xb7   : > { %v531_v54 = vpop.permute.xlu1 %530 }
  0xb8   : > { %v534_v57 = vmul.f32 %v531_v54, %v433_v30  ;;  %v533_v58 = vmul.f32 %v531_v54, %v1122_v32 }
  0xba   : > { %420 = vrot.lane.b32.xlu1 %v415_v46, %s991_s12  ;;  %418 = vrot.lane.b32.xlu0 %v414_v47, %s991_s12 }
  0xbc   : > { %v546_v59 = vpop.permute.xlu1 %545 }
  0xbd   : > { %v549_v60 = vmul.f32 %v546_v59, %v433_v30  ;;  %v548_v61 = vmul.f32 %v546_v59, %v1122_v32 }
  0xbe   : > { %474 = vrot.lane.b32.xlu1 %v469_v48, %s990_s11  ;;  %472 = vrot.lane.b32.xlu0 %v468_v49, %s990_s11 }
  0xc1   : > { %v429_v62 = vpop.permute.xlu1 %428 }
  0xc2   : > { %524 = vrot.lane.b32.xlu1 %v519_v51, %s989_s10  ;;  %522 = vrot.lane.b32.xlu0 %v518_v53, %s989_s10  ;;  %v431_v28 = vmul.f32 %v1122_v32, %v429_v62 }
  0xc6   : > { %489 = vrot.lane.b32.xlu1 %v484_v55, %s991_s12  ;;  %487 = vrot.lane.b32.xlu0 %v483_v56, %s991_s12  ;;  %v496_v0 = vpop.permute.xlu1 %495 }
  0xc7   : > { %v498_v41 = vmul.f32 %v496_v0, %v1122_v32 }
  0xca   : > { %539 = vrot.lane.b32.xlu1 %v534_v57, %s990_s11  ;;  %537 = vrot.lane.b32.xlu0 %v533_v58, %s990_s11  ;;  %s1172_s11 = scalar_lea.hbm %s1226_s5, %s786_s27 }
  0xce   : > { %554 = vrot.lane.b32.xlu1 %v549_v60, %s991_s12  ;;  %552 = vrot.lane.b32.xlu0 %v548_v61, %s991_s12  ;;  %s892_s12 = scalar_lea.vmem %s1174_s7, 128 }
  0xcf   : > { %p893_p12 = scmp.ne.s32.totalorder %s1174_s7, %s892_s12 }
  0xd1   : > { %p894_p13 = pnand %p893_p12, %p1063_p4 }
  0xd3   : > { %p895_p0 = pneg %p894_p13 }
 0x114   : > { %v373_v1 = vpop.permute.xlu1 %372  ;;  %v371_v2 = vpop.permute.xlu0 %370 }
 0x115   : > { %v375_v11 = vsel %vm374_vm3, %v371_v2, %v373_v1 }
 0x116   : > { %v377_v15 = vadd.f32 %v375_v11, %v359_v12 }
 0x118   : > { %v389_v3 = vpop.permute.xlu1 %388  ;;  %v387_v4 = vpop.permute.xlu0 %386 }
 0x119   : > { %v391_v13 = vsel %vm390_vm4, %v387_v4, %v389_v3 }
 0x11a   : > { %v393_v18 = vadd.f32 %v391_v13, %v377_v15 }
 0x11c   : > { %v445_v5 = vpop.permute.xlu1 %444  ;;  %v443_v6 = vpop.permute.xlu0 %442 }
 0x11d   : > { %v446_v27 = vsel %vm374_vm3, %v443_v6, %v445_v5 }
 0x11e   : > { %v448_v31 = vadd.f32 %v446_v27, %v431_v28 }
 0x120   : > { %v405_v7 = vpop.permute.xlu1 %404  ;;  %v403_v8 = vpop.permute.xlu0 %402 }
 0x121   : > { %v407_v17 = vsel %vm406_vm5, %v403_v8, %v405_v7 }
 0x122   : > { %v409_v20 = vadd.f32 %v407_v17, %v393_v18 }
 0x124   : > { %v460_v9 = vpop.permute.xlu1 %459  ;;  %v458_v10 = vpop.permute.xlu0 %457 }
 0x125   : > { %v461_v29 = vsel %vm390_vm4, %v458_v10, %v460_v9 }
 0x126   : > { %v463_v35 = vadd.f32 %v461_v29, %v448_v31 }
 0x128   : > { %v510_v14 = vpop.permute.xlu1 %509  ;;  %v508_v16 = vpop.permute.xlu0 %507 }
 0x129   : > { %v511_v39 = vsel %vm374_vm3, %v508_v16, %v510_v14 }
 0x12a   : > { %v513_v45 = vadd.f32 %v511_v39, %v498_v41 }
 0x12c   : > { %v421_v19 = vpop.permute.xlu1 %420  ;;  %v419_v21 = vpop.permute.xlu0 %418 }
 0x12d   : > { %v423_v22 = vsel %vm422_vm6, %v419_v21, %v421_v19 }
 0x12e   : > { %v425_v24 = vadd.f32 %v423_v22, %v409_v20 }
 0x130   : > { %v475_v25 = vpop.permute.xlu1 %474  ;;  %559 = vadd.xlane.f32.xlu0 %v425_v24  ;;  %v473_v26 = vpop.permute.xlu0 %472  ;;  %v568_v23 = vmul.f32 %v425_v24, %v425_v24 }
 0x131   : > { %v476_v34 = vsel %vm406_vm5, %v473_v26, %v475_v25 }
 0x132   : > { %569 = vadd.xlane.f32.xlu1 %v568_v23  ;;  %v478_v37 = vadd.f32 %v476_v34, %v463_v35 }
 0x134   : > { %v525_v30 = vpop.permute.xlu1 %524  ;;  %v523_v33 = vpop.permute.xlu0 %522 }
 0x135   : > { %v526_v43 = vsel %vm390_vm4, %v523_v33, %v525_v30 }
 0x136   : > { %v528_v48 = vadd.f32 %v526_v43, %v513_v45 }
 0x138   : > { %v490_v36 = vpop.permute.xlu1 %489  ;;  %v488_v38 = vpop.permute.xlu0 %487 }
 0x139   : > { %v491_v40 = vsel %vm422_vm6, %v488_v38, %v490_v36 }
 0x13a   : > { %v493_v42 = vadd.f32 %v491_v40, %v478_v37 }
 0x13c   : > { %v540_v44 = vpop.permute.xlu1 %539  ;;  %578 = vadd.xlane.f32.xlu0 %v493_v42  ;;  %v538_v46 = vpop.permute.xlu0 %537  ;;  %v587_v49 = vmul.f32 %v493_v42, %v493_v42 }
 0x13d   : > { %v541_v47 = vsel %vm406_vm5, %v538_v46, %v540_v44 }
 0x13e   : > { %v543_v51 = vadd.f32 %v541_v47, %v528_v48 }
 0x140   : > { %v555_v50 = vpop.permute.xlu1 %554  ;;  %588 = vadd.xlane.f32.xlu0 %v587_v49  ;;  %v553_v52 = vpop.permute.xlu0 %552 }
 0x141   : > { %v556_v53 = vsel %vm422_vm6, %v553_v52, %v555_v50 }
 0x142   : > { %v558_v54 = vadd.f32 %v556_v53, %v543_v51 }
 0x144   : > { %597 = vadd.xlane.f32.xlu1 %v558_v54  ;;  %v606_v32 = vmul.f32 %v558_v54, %v558_v54 }
 0x146   : > { %607 = vadd.xlane.f32.xlu0 %v606_v32 }
 0x1bd   : > { %v560_v55 = vpop.xlane.xlu0 %559 }
 0x1be   : > { %v561_v56 = vrot.slane %v560_v55, 4 }
 0x1bf   : > { %v570_v57 = vpop.xlane.xlu1 %569 }
 0x1c0   : > { %v562_v58 = vadd.f32 %v561_v56, %v560_v55  ;;  %v571_v59 = vrot.slane %v570_v57, 4 }
 0x1c2   : > { %v563_v60 = vrot.slane %v562_v58, 2  ;;  %v572_v61 = vadd.f32 %v571_v59, %v570_v57 }
 0x1c4   : > { %v573_v62 = vrot.slane %v572_v61, 2  ;;  %v564_v63 = vadd.f32 %v563_v60, %v562_v58 }
 0x1c6   : > { %v565_v0 = vrot.slane %v564_v63, 1  ;;  %v574_v1 = vadd.f32 %v573_v62, %v572_v61 }
 0x1c8   : > { %v566_v2 = vadd.f32 %v565_v0, %v564_v63  ;;  %v575_v3 = vrot.slane %v574_v1, 1 }
 0x1c9   : > { %v579_v4 = vpop.xlane.xlu0 %578 }
 0x1ca   : > { %v580_v5 = vrot.slane %v579_v4, 4  ;;  %789 = vpush %v566_v2  ;;  %v576_v6 = vadd.f32 %v575_v3, %v574_v1 }
 0x1cc   : > { %v581_v7 = vadd.f32 %v580_v5, %v579_v4  ;;  %791 = vpush %v576_v6 }
 0x1cd   : > { %v589_v8 = vpop.xlane.xlu0 %588 }
 0x1ce   : > { %v582_v9 = vrot.slane %v581_v7, 2  ;;  %v590_v10 = vrot.slane %v589_v8, 4 }
 0x1d0   : > { %v591_v11 = vadd.f32 %v590_v10, %v589_v8  ;;  %v583_v12 = vadd.f32 %v582_v9, %v581_v7 }
 0x1d1   : > { %v598_v13 = vpop.xlane.xlu1 %597 }
 0x1d2   : > { %v592_v14 = vrot.slane %v591_v11, 2  ;;  %v599_v15 = vrot.slane %v598_v13, 4  ;;  %v584_v16 = vrot.slane %v583_v12, 1 }
 0x1d3   : > { %v608_v17 = vpop.xlane.xlu0 %607 }
 0x1d4   : > { %v600_v18 = vadd.f32 %v599_v15, %v598_v13  ;;  %v609_v19 = vrot.slane %v608_v17, 4  ;;  %v585_v20 = vadd.f32 %v584_v16, %v583_v12  ;;  %v593_v21 = vadd.f32 %v592_v14, %v591_v11 }
 0x1d6   : > { %v601_v22 = vrot.slane %v600_v18, 2  ;;  %v610_v24 = vadd.f32 %v609_v19, %v608_v17  ;;  %793 = vpush %v585_v20  ;;  %v594_v25 = vrot.slane %v593_v21, 1 }
 0x1d8   : > { %v602_v26 = vadd.f32 %v601_v22, %v600_v18  ;;  %v611_v23 = vrot.slane %v610_v24, 2  ;;  %v595_v27 = vadd.f32 %v594_v25, %v593_v21 }
 0x1da   : > { %v612_v28 = vadd.f32 %v611_v23, %v610_v24  ;;  %795 = vpush %v595_v27  ;;  %v603_v29 = vrot.slane %v602_v26, 1 }
 0x1dc   : > { %v604_v30 = vadd.f32 %v603_v29, %v602_v26  ;;  %v613_v31 = vrot.slane %v612_v28, 1 }
 0x1de   : > { %797 = vpush %v604_v30  ;;  %v614_v33 = vadd.f32 %v613_v31, %v612_v28 }
 0x1e0   : > { %799 = vpush %v614_v33 }
 0x1fb   : > { %s790_s13 = spop %789 }
 0x1fc   : > { %v616_v36 = vstv %s790_s13  ;;  %s992_s13 = smov [#allocation4]  }
 0x1fd   : > { %s792_s15 = spop %791 }
 0x1fe   : > { %v617_v34 = vstv %s792_s15  ;;  %s896_s15 = sshll.u32 %s992_s13, 4  ;;  %s897_s15 = int_to_ptr.vmem [resolvable:$false] %s896_s15 }
 0x1ff   : > { %v623_v38 = vsel %vm622_vm7, %v616_v36, %v617_v34  ;;  %p899_p1 = scmp.lt.s32.totalorder %s1174_s7, %s897_s15 }
 0x207   : > { %s794_s16 = spop %793 }
 0x208   : > { %v618_v35 = vstv %s794_s16  ;;  %s898_s16 = scalar_lea.vmem %s897_s15, 256 }
 0x209   : > { %v625_v39 = vsel %vm624_vm8, %v623_v38, %v618_v35  ;;  %p900_p2 = scmp.lt.s32.totalorder %s898_s16, %s892_s12 }
 0x20b   : > { %s796_s24 = spop %795  ;;  %p901_p3 = por %p900_p2, %p899_p1 }
 0x20c   : > { %v619_v37 = vstv %s796_s24 }
 0x20d   : > { %v627_v40 = vsel %vm626_vm9, %v625_v39, %v619_v37  ;;  %p902_p5 = pnand %p901_p3, %p895_p0 }
 0x20f   : > { %s798_s25 = spop %797 }
 0x210   : > { %v620_v41 = vstv %s798_s25 }
 0x211   : > { %v629_v42 = vsel %vm628_vm10, %v627_v40, %v620_v41  ;;  %s800_s8 = spop %799 }
 0x212   : > { %v621_v43 = vstv %s800_s8 }
 0x213   : > { %v631_v44 = vsel %vm630_vm11, %v629_v42, %v621_v43 }
 0x214   : > { %v633_v45 = vsel %vm632_vm12, %v631_v44, 0.0 }
 0x215   : > { %638 = vst [vmem:[%s298_s29] sm:$0xff] %v633_v45 }
 0x216   : > { %905 = shalt.err (!%p902_p5)
}
 0x217   : > { %s906_s14 = scalar_lea.hbm %s1172_s11, 128  ;;  %s910_s25 = scalar_lea.hbm %s1226_s5, 256 }
 0x218   : > { %p907_p6 = scmp.ne.s32.totalorder %s1172_s11, %s906_s14  ;;  %p911_p10 = scmp.lt.u32.totalorder %s1172_s11, %s1226_s5 }
 0x219   : > { %p912_p11 = scmp.lt.u32.totalorder %s910_s25, %s906_s14  ;;  %p914_p13 = scmp.lt.u32.totalorder %s906_s14, %s1172_s11 }
 0x21a   : > { %p908_p7 = pnand %p907_p6, %p1063_p4 }
 0x21b   : > { %p913_p12 = por %p912_p11, %p911_p10 }
 0x21c   : > { %p909_p9 = pneg %p908_p7 }
 0x21d   : > { %p915_p0 = por %p914_p13, %p913_p12 }
 0x21f   : > { %p916_p1 = pnand %p915_p0, %p909_p9 }
 0x221   : > { %919 = shalt.err (!%p916_p1)
}
 0x222   : > { %801 = dma.vmem_to_hbm [thread:$0]  (%p1063_p4), %s1174_s7, 128, %s1172_s11, %s647_s21  }
 0x223 PF: > { %p807_p2 = scmp.ge.s32.totalorder %s970_s23, 2  ;;  %s672_s8 = sand.u32 1, %s950_s18  }
 0x224   : > { %s673_s9 = scalar_lea.sflag [#allocation5], %s672_s8 }
 0x225   : > { %p804_p3 = pnand %p807_p2, %p1070_p8 }
 0x227   : > { %945 = dma.done.wait (!%p804_p3), %s673_s9, 128  }
 0x228   : > { %947 = vsyncadd (!%p804_p3), %s673_s9, 4294967168  ;;  %s18_s23 = sadd.s32 1, %s970_s23   ;;  %s1229_s18 = smov %s954_s19 }
 0x229   : > { %p15_p5 = scmp.ge.s32.totalorder %s18_s23, 4   ;;  %s1230_s19 = smov %s958_s20 }
 0x22a   : > { %s1231_s20 = smov %s1076_s6  ;;  %s1232_s21 = smov %s966_s22 }
 0x22b   : > { %s1233_s22 = smov %s1235_s26  ;;  %17 = sbr.rel (!%p15_p5) target bundleno = 4 (0x4), region = 92 }
 0x232   :  { %678 = vsyncpa [#allocation5], 1 }
 0x233   :  { %680 = vsyncpa [#allocation5 + $0x1], 1 }

</bundles_post_ra>
